<compile_context>
chip_gen: v7x
topology: tpu7x:2x2x1
jax: 0.10.0
libtpu: 0.0.40
codegen_flags: <defaults>
</compile_context>

<pallas_src>
import functools

import jax
import jax.numpy as jnp
from jax.experimental import pallas as pl
from jax.experimental.pallas import tpu as pltpu

LANE = 128       # lane width (last dim)
SUBLANE = 8      # sublane width (second-to-last dim)
OUT_SLAB = 8     # narrow output slab; only column 0 is real


def _round_up(n: int, m: int) -> int:
    return ((n + m - 1) // m) * m


def _cdiv(a: int, b: int) -> int:
    return -(-a // b)


def _qnet_kernel(x_ref, w1_ref, b1_ref, w2_ref, b2_ref, w3_ref, b3_ref, o_ref):
    # Layer 1: Linear + ReLU (MXU matmul, f32 accumulate; f32 bias add on VPU).
    h1 = jnp.dot(x_ref[...], w1_ref[...], preferred_element_type=jnp.float32)
    h1 = jnp.maximum(h1 + b1_ref[...], 0.0)
    # Layer 2: Linear + ReLU.
    h2 = jnp.dot(h1.astype(w2_ref.dtype), w2_ref[...],
                 preferred_element_type=jnp.float32)
    h2 = jnp.maximum(h2 + b2_ref[...], 0.0)
    # Layer 3: Linear into a narrow 8-lane slab (only column 0 is real).
    o = jnp.dot(h2.astype(w3_ref.dtype), w3_ref[...],
                preferred_element_type=jnp.float32)
    o_ref[...] = (o + b3_ref[...]).astype(o_ref.dtype)


def pad_qnetwork_params(w1, b1, w2, b2, w3, b3, *, compute_dtype=jnp.bfloat16):
    """Pad hidden dims to 128 and cast operands ONCE (hoisted out of forward).

    Zero weight rows/cols + zero biases + ReLU(0)=0 keep the math exact for
    the real rows/columns.  Biases stay f32 (added after f32 accumulation).
    """
    n_in, nn1 = w1.shape
    nn2 = w2.shape[1]
    N1 = _round_up(nn1, LANE)
    N2 = _round_up(nn2, LANE)
    cd = compute_dtype
    f32 = jnp.float32

    w1p = jnp.zeros((n_in, N1), cd).at[:, :nn1].set(w1.astype(cd))
    w2p = jnp.zeros((N1, N2), cd).at[:nn1, :nn2].set(w2.astype(cd))
    w3p = jnp.zeros((N2, OUT_SLAB), cd).at[:nn2, :1].set(w3.astype(cd))
    b1p = jnp.zeros((1, N1), f32).at[:, :nn1].set(b1.reshape(1, -1).astype(f32))
    b2p = jnp.zeros((1, N2), f32).at[:, :nn2].set(b2.reshape(1, -1).astype(f32))
    b3p = jnp.zeros((1, OUT_SLAB), f32).at[:, :1].set(b3.reshape(1, -1).astype(f32))
    return w1p, b1p, w2p, b2p, w3p, b3p


@functools.partial(jax.jit, static_argnames=("block_m",))
def qnetwork_forward(x, w1p, b1p, w2p, b2p, w3p, b3p, *, block_m: int = 1024):
    """QNetwork forward on pre-padded params.  Returns [B, 1] in x.dtype."""
    assert block_m % SUBLANE == 0, "block_m must be a multiple of 8"
    B, n_in = x.shape
    assert w1p.shape[0] == n_in, "w1p must be [n_input, N1] (pre-padded)"
    N1 = w1p.shape[1]
    N2 = w2p.shape[1]
    NO = w3p.shape[1]
    cd = w1p.dtype

    # Batch tiling:
    #  * large tiles amortize the ~0.35 µs per-grid-step cost,
    #  * grid >= 2 whenever B >= 16 so the "parallel" batch axis can be
    #    sharded across both v7x TensorCores,
    #  * TM chosen adaptively so round-up waste stays small.
    Bp8 = _round_up(B, SUBLANE)
    n_tiles = _cdiv(Bp8, block_m)
    if Bp8 >= 2 * SUBLANE:
        n_tiles = max(n_tiles, 2)
    TM = _round_up(_cdiv(Bp8, n_tiles), SUBLANE)
    Bp = n_tiles * TM

    # x stays un-padded on the feature axis (block last dim == full array dim
    # is legal); only the batch axis is zero-padded / cast when needed.
    if Bp == B and x.dtype == cd:
        xp = x
    else:
        xp = jnp.zeros((Bp, n_in), cd).at[:B, :].set(x.astype(cd))

    out_padded = pl.pallas_call(
        _qnet_kernel,
        out_shape=jax.ShapeDtypeStruct((Bp, NO), x.dtype),
        grid=(n_tiles,),
        in_specs=[
            pl.BlockSpec((TM, n_in), lambda i: (i, 0)),   # x tiled over batch
            pl.BlockSpec((n_in, N1), lambda i: (0, 0)),   # weights/biases resident
            pl.BlockSpec((1, N1), lambda i: (0, 0)),
            pl.BlockSpec((N1, N2), lambda i: (0, 0)),
            pl.BlockSpec((1, N2), lambda i: (0, 0)),
            pl.BlockSpec((N2, NO), lambda i: (0, 0)),
            pl.BlockSpec((1, NO), lambda i: (0, 0)),
        ],
        out_specs=pl.BlockSpec((TM, NO), lambda i: (i, 0)),
        compiler_params=pltpu.CompilerParams(
            dimension_semantics=("parallel",),            # shard batch tiles across TCs
        ),
    )(xp, w1p, b1p, w2p, b2p, w3p, b3p)

    # Slice back to the real batch and the single real output column.
    return out_padded[:B, :1]


def init_qnetwork_params(key, n_input, nn_l1=100, nn_l2=100, dtype=jnp.float32):
    """Deterministic PyTorch-style init: U(-1/sqrt(fan_in), 1/sqrt(fan_in))."""
    ks = jax.random.split(key, 6)

    def lin(kw, kb, fan_in, fan_out):
        bound = 1.0 / jnp.sqrt(jnp.asarray(fan_in, dtype))
        w = jax.random.uniform(kw, (fan_in, fan_out), dtype, -bound, bound)
        b = jax.random.uniform(kb, (1, fan_out), dtype, -bound, bound)
        return w, b

    w1, b1 = lin(ks[0], ks[1], n_input, nn_l1)
    w2, b2 = lin(ks[2], ks[3], nn_l1, nn_l2)
    w3, b3 = lin(ks[4], ks[5], nn_l2, 1)
    return w1, b1, w2, b2, w3, b3


def reference_forward(x, w1, b1, w2, b2, w3, b3):
    h1 = jnp.maximum(x @ w1 + b1, 0.0)
    h2 = jnp.maximum(h1 @ w2 + b2, 0.0)
    return h2 @ w3 + b3


if __name__ == "__main__":
    key = jax.random.PRNGKey(0)
    kx, kx2, kp = jax.random.split(key, 3)

    n_input = 32
    nn_l1 = 100   # module defaults -> exercises the 100 -> 128 padding path
    nn_l2 = 100
    params = init_qnetwork_params(kp, n_input, nn_l1, nn_l2)

    # --- f32-operand path (exact vs reference), batch=8 (single tile) ---
    batch = 8
    x = jax.random.normal(kx, (batch, n_input), jnp.float32)
    ref = reference_forward(x, *params)
    padded_f32 = pad_qnetwork_params(*params, compute_dtype=jnp.float32)
    out = jax.block_until_ready(qnetwork_forward(x, *padded_f32))
    assert out.shape == (batch, 1), out.shape
    assert jnp.allclose(out, ref, atol=1e-5, rtol=1e-5), "f32 mismatch vs reference"

    # --- bf16-operand / f32-accumulate path (default), batch=20 ---
    # exercises multi-tile grid (>=2 tiles), ragged batch padding, bf16 cast.
    batch2 = 20
    x2 = jax.random.normal(kx2, (batch2, n_input), jnp.float32)
    ref2 = reference_forward(x2, *params)
    padded_bf16 = pad_qnetwork_params(*params)          # compute_dtype=bf16 default
    out2 = jax.block_until_ready(qnetwork_forward(x2, *padded_bf16))
    assert out2.shape == (batch2, 1), out2.shape
    assert jnp.allclose(out2, ref2, atol=1e-1, rtol=1e-1), "bf16 mismatch vs reference"

    print("KERNEL_OK")
</pallas_src>

<mosaic_0001>
module attributes {stable_mosaic.version = 11 : i64} {
  func.func @_qnet_kernel(%arg0: i32, %arg1: memref<8x32xf32, #tpu.memory_space<vmem>>, %arg2: memref<32x128xf32, #tpu.memory_space<vmem>>, %arg3: memref<1x128xf32, #tpu.memory_space<vmem>>, %arg4: memref<128x128xf32, #tpu.memory_space<vmem>>, %arg5: memref<1x128xf32, #tpu.memory_space<vmem>>, %arg6: memref<128x8xf32, #tpu.memory_space<vmem>>, %arg7: memref<1x8xf32, #tpu.memory_space<vmem>>, %arg8: memref<8x8xf32, #tpu.memory_space<vmem>>) attributes {dimension_semantics = [#tpu.dimension_semantics<parallel>], iteration_bounds = array<i64: 1>, scalar_prefetch = 0 : i64, scratch_operands = 0 : i64, tpu.core_type = #tpu.core_type<tc>, window_params = [{transform_indices = @transform_0, window_bounds = array<i64: 8, 32>}, {pipeline_mode = #tpu.pipeline_mode<synchronous>, transform_indices = @transform_1, window_bounds = array<i64: 32, 128>}, {pipeline_mode = #tpu.pipeline_mode<synchronous>, transform_indices = @transform_2, window_bounds = array<i64: 1, 128>}, {pipeline_mode = #tpu.pipeline_mode<synchronous>, transform_indices = @transform_3, window_bounds = array<i64: 128, 128>}, {pipeline_mode = #tpu.pipeline_mode<synchronous>, transform_indices = @transform_4, window_bounds = array<i64: 1, 128>}, {pipeline_mode = #tpu.pipeline_mode<synchronous>, transform_indices = @transform_5, window_bounds = array<i64: 128, 8>}, {pipeline_mode = #tpu.pipeline_mode<synchronous>, transform_indices = @transform_6, window_bounds = array<i64: 1, 8>}, {transform_indices = @transform_7, window_bounds = array<i64: 8, 8>}]} {
    %c0 = arith.constant 0 : index
    %c0_0 = arith.constant 0 : index
    %0 = vector.load %arg1[%c0, %c0_0] : memref<8x32xf32, #tpu.memory_space<vmem>>, vector<8x32xf32>
    %c0_1 = arith.constant 0 : index
    %c0_2 = arith.constant 0 : index
    %1 = vector.load %arg2[%c0_1, %c0_2] : memref<32x128xf32, #tpu.memory_space<vmem>>, vector<32x128xf32>
    %cst = arith.constant dense<0.000000e+00> : vector<8x128xf32>
    %2 = tpu.matmul %0, %1, %cst {dimension_numbers = #tpu.dot_dimension_numbers<[1], [0], [0], [1], [0, 0, 1, 1], [], []>} : vector<8x32xf32>, vector<32x128xf32>, vector<8x128xf32> -> vector<8x128xf32>
    %c0_3 = arith.constant 0 : index
    %c0_4 = arith.constant 0 : index
    %3 = vector.load %arg3[%c0_3, %c0_4] : memref<1x128xf32, #tpu.memory_space<vmem>>, vector<1x128xf32>
    %4 = vector.broadcast %3 : vector<1x128xf32> to vector<8x128xf32>
    %5 = arith.addf %2, %4 : vector<8x128xf32>
    %cst_5 = arith.constant 0.000000e+00 : f32
    %6 = vector.broadcast %cst_5 : f32 to vector<8x128xf32>
    %7 = arith.maximumf %5, %6 : vector<8x128xf32>
    %c0_6 = arith.constant 0 : index
    %c0_7 = arith.constant 0 : index
    %8 = vector.load %arg4[%c0_6, %c0_7] : memref<128x128xf32, #tpu.memory_space<vmem>>, vector<128x128xf32>
    %cst_8 = arith.constant dense<0.000000e+00> : vector<8x128xf32>
    %9 = tpu.matmul %7, %8, %cst_8 {dimension_numbers = #tpu.dot_dimension_numbers<[1], [0], [0], [1], [0, 0, 1, 1], [], []>} : vector<8x128xf32>, vector<128x128xf32>, vector<8x128xf32> -> vector<8x128xf32>
    %c0_9 = arith.constant 0 : index
    %c0_10 = arith.constant 0 : index
    %10 = vector.load %arg5[%c0_9, %c0_10] : memref<1x128xf32, #tpu.memory_space<vmem>>, vector<1x128xf32>
    %11 = vector.broadcast %10 : vector<1x128xf32> to vector<8x128xf32>
    %12 = arith.addf %9, %11 : vector<8x128xf32>
    %cst_11 = arith.constant 0.000000e+00 : f32
    %13 = vector.broadcast %cst_11 : f32 to vector<8x128xf32>
    %14 = arith.maximumf %12, %13 : vector<8x128xf32>
    %c0_12 = arith.constant 0 : index
    %c0_13 = arith.constant 0 : index
    %15 = vector.load %arg6[%c0_12, %c0_13] : memref<128x8xf32, #tpu.memory_space<vmem>>, vector<128x8xf32>
    %cst_14 = arith.constant dense<0.000000e+00> : vector<8x8xf32>
    %16 = tpu.matmul %14, %15, %cst_14 {dimension_numbers = #tpu.dot_dimension_numbers<[1], [0], [0], [1], [0, 0, 1, 1], [], []>} : vector<8x128xf32>, vector<128x8xf32>, vector<8x8xf32> -> vector<8x8xf32>
    %c0_15 = arith.constant 0 : index
    %c0_16 = arith.constant 0 : index
    %17 = vector.load %arg7[%c0_15, %c0_16] : memref<1x8xf32, #tpu.memory_space<vmem>>, vector<1x8xf32>
    %18 = vector.broadcast %17 : vector<1x8xf32> to vector<8x8xf32>
    %19 = arith.addf %16, %18 : vector<8x8xf32>
    %c0_17 = arith.constant 0 : index
    %c0_18 = arith.constant 0 : index
    %20 = vector.load %arg8[%c0_17, %c0_18] : memref<8x8xf32, #tpu.memory_space<vmem>>, vector<8x8xf32>
    tpu.vector_store %arg8[%c0_17, %c0_18], %19 {strides = array<i32>} : memref<8x8xf32, #tpu.memory_space<vmem>>, vector<8x8xf32>,
    return
  }
  func.func @transform_0(%arg0: i32) -> (i32, i32) {
    %c0_i32 = arith.constant 0 : i32
    %c0_i32_0 = arith.constant 0 : i32
    return %arg0, %c0_i32 : i32, i32
  }
  func.func @transform_1(%arg0: i32) -> (i32, i32) {
    %c0_i32 = arith.constant 0 : i32
    %c0_i32_0 = arith.constant 0 : i32
    %c0_i32_1 = arith.constant 0 : i32
    return %c0_i32, %c0_i32_0 : i32, i32
  }
  func.func @transform_2(%arg0: i32) -> (i32, i32) {
    %c0_i32 = arith.constant 0 : i32
    %c0_i32_0 = arith.constant 0 : i32
    %c0_i32_1 = arith.constant 0 : i32
    return %c0_i32, %c0_i32_0 : i32, i32
  }
  func.func @transform_3(%arg0: i32) -> (i32, i32) {
    %c0_i32 = arith.constant 0 : i32
    %c0_i32_0 = arith.constant 0 : i32
    %c0_i32_1 = arith.constant 0 : i32
    return %c0_i32, %c0_i32_0 : i32, i32
  }
  func.func @transform_4(%arg0: i32) -> (i32, i32) {
    %c0_i32 = arith.constant 0 : i32
    %c0_i32_0 = arith.constant 0 : i32
    %c0_i32_1 = arith.constant 0 : i32
    return %c0_i32, %c0_i32_0 : i32, i32
  }
  func.func @transform_5(%arg0: i32) -> (i32, i32) {
    %c0_i32 = arith.constant 0 : i32
    %c0_i32_0 = arith.constant 0 : i32
    %c0_i32_1 = arith.constant 0 : i32
    return %c0_i32, %c0_i32_0 : i32, i32
  }
  func.func @transform_6(%arg0: i32) -> (i32, i32) {
    %c0_i32 = arith.constant 0 : i32
    %c0_i32_0 = arith.constant 0 : i32
    %c0_i32_1 = arith.constant 0 : i32
    return %c0_i32, %c0_i32_0 : i32, i32
  }
  func.func @transform_7(%arg0: i32) -> (i32, i32) {
    %c0_i32 = arith.constant 0 : i32
    %c0_i32_0 = arith.constant 0 : i32
    return %arg0, %c0_i32 : i32, i32
  }
}

</mosaic_0001>

<bundles_post_ra>
// kernel: qnetwork_forward.1
= control target key start
LH: loop header
LB: loop body
LE: loop exit
PB: predicated region body
PF: predicated region fallthrough
CT: control target
= control target key end

     0   :  { %12 = vsyncpa [#allocation3], 0  ;;  %s529_s24 = smov [#allocation2]   ;;  %s719_s0 = inlined_call_operand.vmem [shape: f32[8,32], index: 0, kind: input, shape index: {}]   ;;  %s720_s1 = inlined_call_operand.hbm [shape: f32[32,128], index: 1, kind: input, shape index: {}]   ;;  %s721_s2 = inlined_call_operand.vmem [shape: f32[1,128], index: 2, kind: input, shape index: {}]   ;;  %s722_s3 = inlined_call_operand.vmem [shape: f32[128,128], index: 3, kind: input, shape index: {}]   ;;  %s723_s4 = inlined_call_operand.vmem [shape: f32[1,128], index: 4, kind: input, shape index: {}]   ;;  %s724_s5 = inlined_call_operand.vmem [shape: f32[128,8], index: 5, kind: input, shape index: {}]   ;;  %s725_s6 = inlined_call_operand.vmem [shape: f32[1,8], index: 6, kind: input, shape index: {}]   ;;  %s726_s7 = inlined_call_operand.vmem [shape: f32[8,8], index: 7, kind: output, shape index: {}]  }
   0x1   :  { %s20_s25 = sshll.u32 %s529_s24, 4  ;;  %s505_s28 = scalar_lea.hbm %s720_s1, 512  ;;  %s21_s25 = int_to_ptr.vmem [resolvable:$true] %s20_s25 }
   0x2   :  { %p506_p0 = scmp.ne.s32.totalorder %s720_s1, %s505_s28  ;;  %p509_p1 = scmp.lt.u32.totalorder %s505_s28, %s720_s1 }
   0x4   :  { %p511_p2 = pnand %p509_p1, %p506_p0 }
   0x6   :  { %514 = shalt.err (!%p511_p2)
}
   0x7   :  { %s515_s10 = scalar_lea.vmem %s21_s25, 512  ;;  %p520_p4 = scmp.lt.s32.totalorder %s21_s25, %s21_s25 }
   0x8   :  { %p516_p3 = scmp.ne.s32.totalorder %s21_s25, %s515_s10  ;;  %p521_p5 = scmp.lt.s32.totalorder %s515_s10, %s515_s10 }
   0xa   :  { %p522_p6 = por %p521_p5, %p520_p4 }
   0xc   :  { %p523_p7 = pnand %p522_p6, %p516_p3 }
   0xe   :  { %526 = shalt.err (!%p523_p7)
}
   0xf   :  { %s530_s11 = smov 128   ;;  %s531_s12 = smov 8  }
  0x10   :  { %26 = dma.hbm_to_vmem [thread:$0]  %s720_s1, 512, %s21_s25, [#allocation3], %s530_s11, %s530_s11, %s531_s12  }
  0x11   :  { %527 = dma.done.wait [#allocation3], 512  }
  0x12   :  { %528 = vsyncadd [#allocation3], 4294966784  ;;  %v532_v0 = vmov 0.0|0.0   ;;  %vm533_vm0 = vmmov 0   ;;  %v534_v1 = vmov 0.0   ;;  %v41_v2 = vld [vmem:[#allocation2] sm:$0xff] }
  0x13   :  { %445 = vmatprep.subr.bf16.mxu0 %v532_v0  ;;  %372 = vmatprep.mubr.msk.f32.mxu0 %vm533_vm0, %v534_v1  ;;  %v42_v3 = vld [vmem:[#allocation2 + $0x8] sm:$0xff]  ;;  %v43_v4 = vld [vmem:[#allocation2 + $0x10] sm:$0xff]  ;;  %v44_v6 = vld [vmem:[#allocation2 + $0x18] sm:$0xff]  ;;  %vm52_vm1 = vcmask 261120   ;;  %vm314_vm2 = vcmask 64512  }
  0x14   :  { %451 = vmatprep.subr.bf16.mxu1 %v532_v0  ;;  %407 = vmatprep.mubr.msk.f32.mxu1 %vm533_vm0, %v534_v1  ;;  %v446_v5 = vpack.c.bf16 %v42_v3, %v41_v2  ;;  %v127_v7 = vld [vmem:[%s722_s3] sm:$0xff]  ;;  %v128_v8 = vld [vmem:[%s722_s3 + $0x8] sm:$0xff]  ;;  %v129_v9 = vld [vmem:[%s722_s3 + $0x10] sm:$0xff]  ;;  %v449_v11 = vpack.c.bf16 %v44_v6, %v43_v4 }
  0x15   :  { %v130_v10 = vld [vmem:[%s722_s3 + $0x18] sm:$0xff]  ;;  %v452_v12 = vpack.c.bf16 %v128_v8, %v127_v7  ;;  %v131_v14 = vld [vmem:[%s722_s3 + $0x20] sm:$0xff]  ;;  %v132_v15 = vld [vmem:[%s722_s3 + $0x28] sm:$0xff] }
  0x16   :  { %447 = vmatpush3.bf16.msra.mxu0 %v446_v5  ;;  %v455_v13 = vpack.c.bf16 %v130_v10, %v129_v9  ;;  %v40_v16 = vld [vmem:[%s719_s0] sm:$0xff]  ;;  %v458_v17 = vpack.c.bf16 %v132_v15, %v131_v14  ;;  %v133_v18 = vld [vmem:[%s722_s3 + $0x30] sm:$0xff]  ;;  %v134_v19 = vld [vmem:[%s722_s3 + $0x38] sm:$0xff] }
  0x17   :  { %448 = vmatprep.subr.bf16.mxu0 %v532_v0  ;;  %453 = vmatpush3.bf16.msra.mxu1 %v452_v12  ;;  %v461_v20 = vpack.c.bf16 %v134_v19, %v133_v18  ;;  %v135_v21 = vld [vmem:[%s722_s3 + $0x40] sm:$0xff]  ;;  %v136_v22 = vld [vmem:[%s722_s3 + $0x48] sm:$0xff]  ;;  %v137_v24 = vld [vmem:[%s722_s3 + $0x50] sm:$0xff] }
  0x18   :  { %454 = vmatprep.subr.bf16.mxu1 %v532_v0  ;;  %v464_v23 = vpack.c.bf16 %v136_v22, %v135_v21  ;;  %v138_v25 = vld [vmem:[%s722_s3 + $0x58] sm:$0xff]  ;;  %v139_v27 = vld [vmem:[%s722_s3 + $0x60] sm:$0xff]  ;;  %v140_v28 = vld [vmem:[%s722_s3 + $0x68] sm:$0xff] }
  0x19   :  { %v467_v26 = vpack.c.bf16 %v138_v25, %v137_v24  ;;  %v470_v29 = vpack.c.bf16 %v140_v28, %v139_v27  ;;  %v141_v30 = vld [vmem:[%s722_s3 + $0x70] sm:$0xff]  ;;  %v142_v31 = vld [vmem:[%s722_s3 + $0x78] sm:$0xff]  ;;  %v221_v33 = vld [vmem:[%s724_s5] sm:$0xff] }
  0x1a   :  { %450 = vmatpush3.bf16.msra.mxu0 %v449_v11  ;;  %v473_v32 = vpack.c.bf16 %v142_v31, %v141_v30  ;;  %v222_v34 = vld [vmem:[%s724_s5 + $0x8] sm:$0xff]  ;;  %v223_v35 = vld [vmem:[%s724_s5 + $0x10] sm:$0xff]  ;;  %v224_v37 = vld [vmem:[%s724_s5 + $0x18] sm:$0xff] }
  0x1b   :  { %475 = vmatprep.subr.bf16.mxu0 %v532_v0  ;;  %456 = vmatpush3.bf16.msra.mxu1 %v455_v13  ;;  %v476_v36 = vpack.c.bf16 %v222_v34, %v221_v33  ;;  %v479_v38 = vpack.c.bf16 %v224_v37, %v223_v35  ;;  %v225_v39 = vld [vmem:[%s724_s5 + $0x20] sm:$0xff]  ;;  %v226_v40 = vld [vmem:[%s724_s5 + $0x28] sm:$0xff]  ;;  %v227_v42 = vld [vmem:[%s724_s5 + $0x30] sm:$0xff] }
  0x1c   :  { %457 = vmatprep.subr.bf16.mxu1 %v532_v0  ;;  %v482_v41 = vpack.c.bf16 %v226_v40, %v225_v39  ;;  %v228_v43 = vld [vmem:[%s724_s5 + $0x38] sm:$0xff]  ;;  %v229_v45 = vld [vmem:[%s724_s5 + $0x40] sm:$0xff]  ;;  %v230_v46 = vld [vmem:[%s724_s5 + $0x48] sm:$0xff] }
  0x1d   :  { %373 = vmatmul.mubr.msk.f32.vlgmr.msra.gmra.mrb[0].mxu0 %vm52_vm1, %v40_v16  ;;  %v485_v44 = vpack.c.bf16 %v228_v43, %v227_v42  ;;  %v488_v47 = vpack.c.bf16 %v230_v46, %v229_v45  ;;  %v231_v48 = vld [vmem:[%s724_s5 + $0x50] sm:$0xff]  ;;  %v232_v49 = vld [vmem:[%s724_s5 + $0x58] sm:$0xff]  ;;  %v233_v51 = vld [vmem:[%s724_s5 + $0x60] sm:$0xff] }
  0x1e   :  { %442 = vmatprep.mubr.msk.f32.mxu0 %vm533_vm0, %v534_v1  ;;  %477 = vmatpush3.bf16.msra.mxu0 %v476_v36  ;;  %v491_v50 = vpack.c.bf16 %v232_v49, %v231_v48  ;;  %v234_v52 = vld [vmem:[%s724_s5 + $0x68] sm:$0xff]  ;;  %v321_v54 = vld [vmem:[%s721_s2] ss:$0 sm:$0xff]  ;;  %v235_v59 = vld [vmem:[%s724_s5 + $0x70] sm:$0xff] }
  0x1f   :  { %459 = vmatpush3.bf16.msra.mxu1 %v458_v17  ;;  %478 = vmatprep.subr.bf16.mxu0 %v532_v0  ;;  %v494_v53 = vpack.c.bf16 %v234_v52, %v233_v51  ;;  %v236_v60 = vld [vmem:[%s724_s5 + $0x78] sm:$0xff]  ;;  %v323_v62 = vld [vmem:[%s723_s4] ss:$0 sm:$0xff] }
  0x20   :  { %460 = vmatprep.subr.bf16.mxu1 %v532_v0  ;;  %v497_v61 = vpack.c.bf16 %v236_v60, %v235_v59  ;;  %v324_v3 = vld [vmem:[%s725_s6] ss:$0 sm:$0xff] }
  0x22   :  { %480 = vmatpush3.bf16.msra.mxu0 %v479_v38 }
  0x23   :  { %462 = vmatpush3.bf16.msra.mxu1 %v461_v20  ;;  %481 = vmatprep.subr.bf16.mxu0 %v532_v0 }
  0x24   :  { %463 = vmatprep.subr.bf16.mxu1 %v532_v0 }
  0x26   :  { %483 = vmatpush3.bf16.msra.mxu0 %v482_v41 }
  0x27   :  { %465 = vmatpush3.bf16.msra.mxu1 %v464_v23  ;;  %484 = vmatprep.subr.bf16.mxu0 %v532_v0 }
  0x28   :  { %466 = vmatprep.subr.bf16.mxu1 %v532_v0 }
  0x2a   :  { %486 = vmatpush3.bf16.msra.mxu0 %v485_v44 }
  0x2b   :  { %468 = vmatpush3.bf16.msra.mxu1 %v467_v26  ;;  %487 = vmatprep.subr.bf16.mxu0 %v532_v0 }
  0x2c   :  { %469 = vmatprep.subr.bf16.mxu1 %v532_v0 }
  0x2e   :  { %489 = vmatpush3.bf16.msra.mxu0 %v488_v47 }
  0x2f   :  { %471 = vmatpush3.bf16.msra.mxu1 %v470_v29  ;;  %490 = vmatprep.subr.bf16.mxu0 %v532_v0 }
  0x30   :  { %472 = vmatprep.subr.bf16.mxu1 %v532_v0 }
  0x32   :  { %492 = vmatpush3.bf16.msra.mxu0 %v491_v50 }
  0x33   :  { %474 = vmatpush3.bf16.msra.mxu1 %v473_v32  ;;  %493 = vmatprep.subr.bf16.mxu0 %v532_v0 }
  0x36   :  { %495 = vmatpush3.bf16.msra.mxu0 %v494_v53 }
  0x37   :  { %496 = vmatprep.subr.bf16.mxu0 %v532_v0 }
  0x3a   :  { %498 = vmatpush3.bf16.msra.mxu0 %v497_v61 }
  0xf0   :  { %v122_v55 = vpop.f32.mrb[0].mxu0 }
  0xf1   :  { %v123_v56 = vadd.f32 %v321_v54, %v122_v55  ;;  %v374_v57 = vpop.f32.mrb[1].mxu0 }
  0xf3   :  { %v126_v58 = vmax.f32 %v123_v56, 0.0 }
  0xf5   :  { %408 = vmatmul.mubr.f32.vlgmr.msra.gmra.mrb[0].mxu1 %v126_v58 }
 0x1c8   :  { %v216_v63 = vpop.f32.mrb[0].mxu1 }
 0x1c9   :  { %v217_v0 = vadd.f32 %v323_v62, %v216_v63  ;;  %v409_v1 = vpop.f32.mrb[1].mxu1 }
 0x1cb   :  { %v220_v2 = vmax.f32 %v217_v0, 0.0 }
 0x1cd   :  { %443 = vmatmul.mubr.f32.vlgmr.msra.gmra.mrb[2].mxu0 %v220_v2 }
 0x2a0   :  { %v310_v4 = vpop.f32.mrb[2].mxu0 }
 0x2a1   :  { %v311_v5 = vadd.f32 %v324_v3, %v310_v4  ;;  %v444_v6 = vpop.f32.mrb[3].mxu0 }
 0x2a3   :  { %315 = vst.msk [vmem:[%s726_s7] sm:$0xff] %vm314_vm2, %v311_v5 }
 0x2a4   :  { %320 = vsyncpa [#allocation3], 1 }

</bundles_post_ra>
